<compile_context>
chip_gen: v5e
topology: v5e:2x2
jax: 0.10.0
libtpu: 0.0.40
codegen_flags: <defaults>
</compile_context>

<pallas_src>
import math
from functools import partial

import jax
import jax.numpy as jnp
from jax.experimental import pallas as pl
from jax.experimental.pallas import tpu as pltpu

EPS = 1e-5


def _rmsnorm(x, w, eps=EPS):
    var = jnp.mean(x * x, axis=-1, keepdims=True)
    return x * jax.lax.rsqrt(var + eps) * w


def smollm2_block_kernel(x_ref, cos_ref, sin_ref, mask_ref,
                         wqkv_ref, wo_ref, wgu_ref, wd_ref,
                         g_in_ref, g_post_ref,
                         o_ref, *,
                         num_heads, num_kv_heads, head_dim, hidden, inter):
    H = hidden
    KD = num_kv_heads * head_dim
    group = num_heads // num_kv_heads

    x = x_ref[...].astype(jnp.float32)          # [S, H]  residual stream (f32)
    S = x.shape[0]
    cos_q = cos_ref[...].astype(jnp.float32)    # [S, H]  cos tiled per head
    sin_q = sin_ref[...].astype(jnp.float32)    # [S, H]
    mask = mask_ref[...].astype(jnp.float32)    # [S, S]  additive mask (shared across batch)

    # ---- input RMSNorm (f32 stats), bf16 activations for the MXU ----
    xn = _rmsnorm(x, g_in_ref[...].astype(jnp.float32))
    xn_b = xn.astype(jnp.bfloat16)

    # ---- fused projection: [ q*scale | k | v | rotate_half(q*scale) | rotate_half(k) ] ----
    qkv = jnp.dot(xn_b, wqkv_ref[...], preferred_element_type=jnp.float32)  # [S, 2H+3KD] f32
    q = qkv[:, :H]
    k = qkv[:, H:H + KD]
    v = qkv[:, H + KD:H + 2 * KD]
    qr = qkv[:, H + 2 * KD:2 * H + 2 * KD]
    kr = qkv[:, 2 * H + 2 * KD:]

    # RoPE: rotate_half already baked into the weight columns -> pure element-wise VPU work.
    q = q * cos_q + qr * sin_q                          # [S, H]   (already 1/sqrt(hd)-scaled)
    k = k * cos_q[:, :KD] + kr * sin_q[:, :KD]          # [S, KD]

    # mask replicated once for the row-stacked query heads of a KV group
    mask_g = jnp.concatenate([mask] * group, axis=0) if group > 1 else mask

    # ---- GQA attention, one KV head (= `group` query heads) per matmul pair ----
    head_outs = [None] * num_heads
    for kv in range(num_kv_heads):
        kh = k[:, kv * head_dim:(kv + 1) * head_dim].astype(jnp.bfloat16)   # [S, hd]
        vh = v[:, kv * head_dim:(kv + 1) * head_dim].astype(jnp.bfloat16)   # [S, hd]

        base = kv * group * head_dim
        if group > 1:
            qg = jnp.concatenate(
                [q[:, base + g * head_dim: base + (g + 1) * head_dim]
                 for g in range(group)], axis=0)                            # [group*S, hd]
        else:
            qg = q[:, base:base + head_dim]
        qg = qg.astype(jnp.bfloat16)

        # scores: contract head_dim of qg against head_dim of kh (no explicit transpose)
        s = jax.lax.dot_general(qg, kh, (((1,), (1,)), ((), ())),
                                preferred_element_type=jnp.float32)         # [group*S, S]
        s = s + mask_g
        s = s - jnp.max(s, axis=-1, keepdims=True)
        p = jnp.exp(s)
        p = p * pl.reciprocal(jnp.sum(p, axis=-1, keepdims=True), approx=True)

        og = jnp.dot(p.astype(jnp.bfloat16), vh,
                     preferred_element_type=jnp.float32)                    # [group*S, hd]
        for g in range(group):
            head_outs[kv * group + g] = og[g * S:(g + 1) * S, :]

    attn = jnp.concatenate(head_outs, axis=-1)                              # [S, H]
    attn = jnp.dot(attn.astype(jnp.bfloat16), wo_ref[...],
                   preferred_element_type=jnp.float32)

    h1 = x + attn                                                           # residual (f32)

    # ---- post-attention RMSNorm + fused gate/up SwiGLU MLP ----
    hn = _rmsnorm(h1, g_post_ref[...].astype(jnp.float32)).astype(jnp.bfloat16)
    gu = jnp.dot(hn, wgu_ref[...], preferred_element_type=jnp.float32)      # [S, 2*I] f32
    g = gu[:, :inter]
    u = gu[:, inter:]
    act = g * jax.nn.sigmoid(g)                                             # SiLU (EUP)
    m = jnp.dot((act * u).astype(jnp.bfloat16), wd_ref[...],
                preferred_element_type=jnp.float32)

    o_ref[...] = (h1 + m).astype(o_ref.dtype)


def smollm2_block(x, cos, sin, mask, params, *, num_heads, num_kv_heads):
    """mask: additive [S, S] mask shared across the batch (e.g. causal)."""
    B, S, H = x.shape
    head_dim = H // num_heads
    KD = num_kv_heads * head_dim
    I = params["w_gate"].shape[1]
    half = head_dim // 2
    scale = 1.0 / math.sqrt(head_dim)

    def rot_half_cols(w):
        # Column rearrangement s.t.  x @ rot_half_cols(w) == rotate_half_per_head(x @ w).
        w3 = w.reshape(w.shape[0], -1, head_dim)
        return jnp.concatenate([-w3[..., half:], w3[..., :half]],
                               axis=-1).reshape(w.shape[0], -1)

    # Fuse + cast weights once on the host side (bf16 operands, f32 accumulation on-chip).
    wq = params["w_q"] * scale                       # fold 1/sqrt(hd) into the Q projection
    wk = params["w_k"]
    wqkv = jnp.concatenate(
        [wq, wk, params["w_v"], rot_half_cols(wq), rot_half_cols(wk)],
        axis=1).astype(jnp.bfloat16)                 # [H, 2H + 3*KD]
    wgu = jnp.concatenate([params["w_gate"], params["w_up"]],
                          axis=1).astype(jnp.bfloat16)   # [H, 2*I]
    wo = params["w_o"].astype(jnp.bfloat16)          # [H, H]
    wd = params["w_down"].astype(jnp.bfloat16)       # [I, H]

    # RoPE tables tiled per head once on the host (K reuses the first KD lanes).
    cos_q = jnp.tile(cos.astype(jnp.float32), (1, num_heads))   # [S, H]
    sin_q = jnp.tile(sin.astype(jnp.float32), (1, num_heads))   # [S, H]

    def full(shape):
        n = len(shape)
        return pl.BlockSpec(shape, lambda b, _n=n: (0,) * _n)

    kernel = partial(smollm2_block_kernel, num_heads=num_heads,
                     num_kv_heads=num_kv_heads, head_dim=head_dim,
                     hidden=H, inter=I)

    return pl.pallas_call(
        kernel,
        out_shape=jax.ShapeDtypeStruct((B, S, H), x.dtype),
        grid=(B,),
        in_specs=[
            pl.BlockSpec((None, S, H), lambda b: (b, 0, 0)),   # x (per-batch tile)
            full((S, H)),                                      # tiled cos
            full((S, H)),                                      # tiled sin
            full((S, S)),                                      # shared additive mask
            full((H, 2 * H + 3 * KD)),                         # fused w_qkv(+rot) (bf16)
            full((H, H)),                                      # w_o (bf16)
            full((H, 2 * I)),                                  # fused w_gate|w_up (bf16)
            full((I, H)),                                      # w_down (bf16)
            full((1, H)),                                      # input_layernorm weight
            full((1, H)),                                      # post_attention_layernorm weight
        ],
        out_specs=pl.BlockSpec((None, S, H), lambda b: (b, 0, 0)),
        compiler_params=pltpu.CompilerParams(
            dimension_semantics=("parallel",),
            vmem_limit_bytes=48 * 1024 * 1024),
    )(x, cos_q, sin_q, mask, wqkv, wo, wgu, wd, params["g_in"], params["g_post"])


# ------------------------- pure-JAX reference (f32) ------------------------------
def reference_block(x, cos, sin, mask, params, num_heads, num_kv_heads):
    B, S, H = x.shape
    hd = H // num_heads

    def rms(t, w):
        return t * jax.lax.rsqrt(jnp.mean(t * t, -1, keepdims=True) + EPS) * w

    xn = rms(x, params["g_in"][0])
    q = xn @ params["w_q"]
    k = xn @ params["w_k"]
    v = xn @ params["w_v"]
    q = q.reshape(B, S, num_heads, hd).transpose(0, 2, 1, 3)
    k = k.reshape(B, S, num_kv_heads, hd).transpose(0, 2, 1, 3)
    v = v.reshape(B, S, num_kv_heads, hd).transpose(0, 2, 1, 3)
    c = cos[None, None]
    s = sin[None, None]

    def rot(t):
        t1, t2 = jnp.split(t, 2, axis=-1)
        return jnp.concatenate([-t2, t1], axis=-1)

    q = q * c + rot(q) * s
    k = k * c + rot(k) * s
    rep = num_heads // num_kv_heads
    k = jnp.repeat(k, rep, axis=1)
    v = jnp.repeat(v, rep, axis=1)
    aw = jnp.einsum('bhqd,bhkd->bhqk', q, k) / math.sqrt(hd)
    aw = aw + mask[None, None]
    aw = jax.nn.softmax(aw, axis=-1)
    o = jnp.einsum('bhqk,bhkd->bhqd', aw, v)
    o = o.transpose(0, 2, 1, 3).reshape(B, S, H)
    o = o @ params["w_o"]
    h1 = x + o
    hn = rms(h1, params["g_post"][0])
    g = hn @ params["w_gate"]
    u = hn @ params["w_up"]
    m = (g * jax.nn.sigmoid(g) * u) @ params["w_down"]
    return h1 + m


if __name__ == "__main__":
    # Small config consistent with the module structure (GQA: 4 q-heads, 2 kv-heads).
    B, S, H = 2, 8, 32
    num_heads, num_kv_heads = 4, 2
    head_dim = H // num_heads
    intermediate = 64

    key = jax.random.PRNGKey(0)
    ks = jax.random.split(key, 10)
    sc = 0.05
    params = {
        "w_q":    sc * jax.random.normal(ks[0], (H, H), jnp.float32),
        "w_k":    sc * jax.random.normal(ks[1], (H, num_kv_heads * head_dim), jnp.float32),
        "w_v":    sc * jax.random.normal(ks[2], (H, num_kv_heads * head_dim), jnp.float32),
        "w_o":    sc * jax.random.normal(ks[3], (H, H), jnp.float32),
        "w_gate": sc * jax.random.normal(ks[4], (H, intermediate), jnp.float32),
        "w_up":   sc * jax.random.normal(ks[5], (H, intermediate), jnp.float32),
        "w_down": sc * jax.random.normal(ks[6], (intermediate, H), jnp.float32),
        "g_in":   jnp.ones((1, H), jnp.float32),
        "g_post": jnp.ones((1, H), jnp.float32),
    }

    x = jax.random.normal(ks[7], (B, S, H), jnp.float32)

    # RoPE tables.
    pos = jnp.arange(S, dtype=jnp.float32)
    inv_freq = 1.0 / (10000.0 ** (jnp.arange(0, head_dim, 2, dtype=jnp.float32) / head_dim))
    freqs = pos[:, None] * inv_freq[None, :]            # [S, hd/2]
    emb = jnp.concatenate([freqs, freqs], axis=-1)      # [S, hd]
    cos = jnp.cos(emb)
    sin = jnp.sin(emb)

    # Shared additive causal attention mask [S, S].
    causal = jnp.tril(jnp.ones((S, S), jnp.bool_))
    mask = jnp.where(causal, 0.0, -1e9).astype(jnp.float32)

    out = smollm2_block(x, cos, sin, mask, params,
                        num_heads=num_heads, num_kv_heads=num_kv_heads)
    out = jax.block_until_ready(out)

    ref = reference_block(x, cos, sin, mask, params, num_heads, num_kv_heads)
    assert out.shape == (B, S, H)
    # Kernel uses bf16 matmul operands (f32 accumulation); allow bf16-level tolerance.
    assert jnp.allclose(out, ref, atol=2e-2, rtol=2e-2), \
        f"max abs diff {jnp.max(jnp.abs(out - ref))}"

    print("KERNEL_OK")
</pallas_src>

<mosaic_0001>
module attributes {stable_mosaic.version = 11 : i64} {
  func.func @smollm2_block_kernel(%arg0: i32, %arg1: memref<1x8x32xf32, #tpu.memory_space<vmem>>, %arg2: memref<8x32xf32, #tpu.memory_space<vmem>>, %arg3: memref<8x32xf32, #tpu.memory_space<vmem>>, %arg4: memref<8x8xf32, #tpu.memory_space<vmem>>, %arg5: memref<32x112xbf16, #tpu.memory_space<vmem>>, %arg6: memref<32x32xbf16, #tpu.memory_space<vmem>>, %arg7: memref<32x128xbf16, #tpu.memory_space<vmem>>, %arg8: memref<64x32xbf16, #tpu.memory_space<vmem>>, %arg9: memref<1x32xf32, #tpu.memory_space<vmem>>, %arg10: memref<1x32xf32, #tpu.memory_space<vmem>>, %arg11: memref<1x8x32xf32, #tpu.memory_space<vmem>>) attributes {dimension_semantics = [#tpu.dimension_semantics<parallel>], iteration_bounds = array<i64: 2>, scalar_prefetch = 0 : i64, scratch_operands = 0 : i64, tpu.core_type = #tpu.core_type<tc>, window_params = [{transform_indices = @transform_0, window_bounds = array<i64: 1, 8, 32>}, {pipeline_mode = #tpu.pipeline_mode<synchronous>, transform_indices = @transform_1, window_bounds = array<i64: 8, 32>}, {pipeline_mode = #tpu.pipeline_mode<synchronous>, transform_indices = @transform_2, window_bounds = array<i64: 8, 32>}, {pipeline_mode = #tpu.pipeline_mode<synchronous>, transform_indices = @transform_3, window_bounds = array<i64: 8, 8>}, {pipeline_mode = #tpu.pipeline_mode<synchronous>, transform_indices = @transform_4, window_bounds = array<i64: 32, 112>}, {pipeline_mode = #tpu.pipeline_mode<synchronous>, transform_indices = @transform_5, window_bounds = array<i64: 32, 32>}, {pipeline_mode = #tpu.pipeline_mode<synchronous>, transform_indices = @transform_6, window_bounds = array<i64: 32, 128>}, {pipeline_mode = #tpu.pipeline_mode<synchronous>, transform_indices = @transform_7, window_bounds = array<i64: 64, 32>}, {pipeline_mode = #tpu.pipeline_mode<synchronous>, transform_indices = @transform_8, window_bounds = array<i64: 1, 32>}, {pipeline_mode = #tpu.pipeline_mode<synchronous>, transform_indices = @transform_9, window_bounds = array<i64: 1, 32>}, {transform_indices = @transform_10, window_bounds = array<i64: 1, 8, 32>}]} {
    %c0 = arith.constant 0 : index
    %c0_0 = arith.constant 0 : index
    %c0_1 = arith.constant 0 : index
    %0 = vector.load %arg1[%c0, %c0_0, %c0_1] : memref<1x8x32xf32, #tpu.memory_space<vmem>>, vector<1x8x32xf32>
    %1 = vector.shape_cast %0 : vector<1x8x32xf32> to vector<8x32xf32>
    %c0_2 = arith.constant 0 : index
    %c0_3 = arith.constant 0 : index
    %2 = vector.load %arg2[%c0_2, %c0_3] : memref<8x32xf32, #tpu.memory_space<vmem>>, vector<8x32xf32>
    %c0_4 = arith.constant 0 : index
    %c0_5 = arith.constant 0 : index
    %3 = vector.load %arg3[%c0_4, %c0_5] : memref<8x32xf32, #tpu.memory_space<vmem>>, vector<8x32xf32>
    %c0_6 = arith.constant 0 : index
    %c0_7 = arith.constant 0 : index
    %4 = vector.load %arg4[%c0_6, %c0_7] : memref<8x8xf32, #tpu.memory_space<vmem>>, vector<8x8xf32>
    %c0_8 = arith.constant 0 : index
    %c0_9 = arith.constant 0 : index
    %5 = vector.load %arg9[%c0_8, %c0_9] : memref<1x32xf32, #tpu.memory_space<vmem>>, vector<1x32xf32>
    %6 = arith.mulf %1, %1 : vector<8x32xf32>
    %cst = arith.constant dense<0.000000e+00> : vector<8xf32>
    %7 = vector.multi_reduction <add>, %6, %cst [1] : vector<8x32xf32> to vector<8xf32>
    %8 = vector.shape_cast %7 : vector<8xf32> to vector<8x1xf32>
    %cst_10 = arith.constant 3.200000e+01 : f32
    %9 = vector.broadcast %cst_10 : f32 to vector<8x1xf32>
    %10 = arith.divf %8, %9 : vector<8x1xf32>
    %cst_11 = arith.constant 9.99999974E-6 : f32
    %11 = vector.broadcast %cst_11 : f32 to vector<8x1xf32>
    %12 = arith.addf %10, %11 : vector<8x1xf32>
    %13 = math.rsqrt %12 : vector<8x1xf32>
    %14 = vector.broadcast %13 : vector<8x1xf32> to vector<8x32xf32>
    %15 = arith.mulf %1, %14 : vector<8x32xf32>
    %16 = vector.broadcast %5 : vector<1x32xf32> to vector<8x32xf32>
    %17 = arith.mulf %15, %16 : vector<8x32xf32>
    %18 = arith.truncf %17 : vector<8x32xf32> to vector<8x32xbf16>
    %c0_12 = arith.constant 0 : index
    %c0_13 = arith.constant 0 : index
    %19 = vector.load %arg5[%c0_12, %c0_13] : memref<32x112xbf16, #tpu.memory_space<vmem>>, vector<32x112xbf16>
    %cst_14 = arith.constant dense<0.000000e+00> : vector<8x112xf32>
    %20 = tpu.matmul %18, %19, %cst_14 {dimension_numbers = #tpu.dot_dimension_numbers<[1], [0], [0], [1], [0, 0, 1, 1], [], []>} : vector<8x32xbf16>, vector<32x112xbf16>, vector<8x112xf32> -> vector<8x112xf32>
    %21 = vector.extract_strided_slice %20 {offsets = [0, 0], sizes = [8, 32], strides = [1, 1]} : vector<8x112xf32> to vector<8x32xf32>
    %22 = vector.extract_strided_slice %20 {offsets = [0, 32], sizes = [8, 16], strides = [1, 1]} : vector<8x112xf32> to vector<8x16xf32>
    %23 = vector.extract_strided_slice %20 {offsets = [0, 48], sizes = [8, 16], strides = [1, 1]} : vector<8x112xf32> to vector<8x16xf32>
    %24 = vector.extract_strided_slice %20 {offsets = [0, 64], sizes = [8, 32], strides = [1, 1]} : vector<8x112xf32> to vector<8x32xf32>
    %25 = vector.extract_strided_slice %20 {offsets = [0, 96], sizes = [8, 16], strides = [1, 1]} : vector<8x112xf32> to vector<8x16xf32>
    %26 = arith.mulf %21, %2 : vector<8x32xf32>
    %27 = arith.mulf %24, %3 : vector<8x32xf32>
    %28 = arith.addf %26, %27 : vector<8x32xf32>
    %29 = vector.extract_strided_slice %2 {offsets = [0, 0], sizes = [8, 16], strides = [1, 1]} : vector<8x32xf32> to vector<8x16xf32>
    %30 = arith.mulf %22, %29 : vector<8x16xf32>
    %31 = vector.extract_strided_slice %3 {offsets = [0, 0], sizes = [8, 16], strides = [1, 1]} : vector<8x32xf32> to vector<8x16xf32>
    %32 = arith.mulf %25, %31 : vector<8x16xf32>
    %33 = arith.addf %30, %32 : vector<8x16xf32>
    %34 = tpu.concatenate %4, %4 in 0 : vector<8x8xf32>, vector<8x8xf32> -> vector<16x8xf32>
    %35 = vector.extract_strided_slice %33 {offsets = [0, 0], sizes = [8, 8], strides = [1, 1]} : vector<8x16xf32> to vector<8x8xf32>
    %36 = arith.truncf %35 : vector<8x8xf32> to vector<8x8xbf16>
    %37 = vector.extract_strided_slice %23 {offsets = [0, 0], sizes = [8, 8], strides = [1, 1]} : vector<8x16xf32> to vector<8x8xf32>
    %38 = arith.truncf %37 : vector<8x8xf32> to vector<8x8xbf16>
    %39 = vector.extract_strided_slice %28 {offsets = [0, 0], sizes = [8, 8], strides = [1, 1]} : vector<8x32xf32> to vector<8x8xf32>
    %40 = vector.extract_strided_slice %28 {offsets = [0, 8], sizes = [8, 8], strides = [1, 1]} : vector<8x32xf32> to vector<8x8xf32>
    %41 = tpu.concatenate %39, %40 in 0 : vector<8x8xf32>, vector<8x8xf32> -> vector<16x8xf32>
    %42 = arith.truncf %41 : vector<16x8xf32> to vector<16x8xbf16>
    %cst_15 = arith.constant dense<0.000000e+00> : vector<16x8xf32>
    %43 = tpu.matmul %42, %36, %cst_15 {dimension_numbers = #tpu.dot_dimension_numbers<[1], [1], [0], [0], [0, 0, 1, 0], [], []>} : vector<16x8xbf16>, vector<8x8xbf16>, vector<16x8xf32> -> vector<16x8xf32>
    %44 = arith.addf %43, %34 : vector<16x8xf32>
    %cst_16 = arith.constant dense<0xFF800000> : vector<16xf32>
    %45 = vector.multi_reduction <maximumf>, %44, %cst_16 [1] : vector<16x8xf32> to vector<16xf32>
    %46 = vector.shape_cast %45 : vector<16xf32> to vector<16x1xf32>
    %47 = vector.broadcast %46 : vector<16x1xf32> to vector<16x8xf32>
    %48 = arith.subf %44, %47 : vector<16x8xf32>
    %49 = math.exp %48 : vector<16x8xf32>
    %cst_17 = arith.constant dense<0.000000e+00> : vector<16xf32>
    %50 = vector.multi_reduction <add>, %49, %cst_17 [1] : vector<16x8xf32> to vector<16xf32>
    %51 = vector.shape_cast %50 : vector<16xf32> to vector<16x1xf32>
    %52 = tpu.reciprocal %51 {approx = true} : vector<16x1xf32> -> vector<16x1xf32>
    %53 = vector.broadcast %52 : vector<16x1xf32> to vector<16x8xf32>
    %54 = arith.mulf %49, %53 : vector<16x8xf32>
    %55 = arith.truncf %54 : vector<16x8xf32> to vector<16x8xbf16>
    %cst_18 = arith.constant dense<0.000000e+00> : vector<16x8xf32>
    %56 = tpu.matmul %55, %38, %cst_18 {dimension_numbers = #tpu.dot_dimension_numbers<[1], [0], [0], [1], [0, 0, 1, 1], [], []>} : vector<16x8xbf16>, vector<8x8xbf16>, vector<16x8xf32> -> vector<16x8xf32>
    %57 = vector.extract_strided_slice %56 {offsets = [0, 0], sizes = [8, 8], strides = [1, 1]} : vector<16x8xf32> to vector<8x8xf32>
    %58 = vector.extract_strided_slice %56 {offsets = [8, 0], sizes = [8, 8], strides = [1, 1]} : vector<16x8xf32> to vector<8x8xf32>
    %59 = vector.extract_strided_slice %33 {offsets = [0, 8], sizes = [8, 8], strides = [1, 1]} : vector<8x16xf32> to vector<8x8xf32>
    %60 = arith.truncf %59 : vector<8x8xf32> to vector<8x8xbf16>
    %61 = vector.extract_strided_slice %23 {offsets = [0, 8], sizes = [8, 8], strides = [1, 1]} : vector<8x16xf32> to vector<8x8xf32>
    %62 = arith.truncf %61 : vector<8x8xf32> to vector<8x8xbf16>
    %63 = vector.extract_strided_slice %28 {offsets = [0, 16], sizes = [8, 8], strides = [1, 1]} : vector<8x32xf32> to vector<8x8xf32>
    %64 = vector.extract_strided_slice %28 {offsets = [0, 24], sizes = [8, 8], strides = [1, 1]} : vector<8x32xf32> to vector<8x8xf32>
    %65 = tpu.concatenate %63, %64 in 0 : vector<8x8xf32>, vector<8x8xf32> -> vector<16x8xf32>
    %66 = arith.truncf %65 : vector<16x8xf32> to vector<16x8xbf16>
    %cst_19 = arith.constant dense<0.000000e+00> : vector<16x8xf32>
    %67 = tpu.matmul %66, %60, %cst_19 {dimension_numbers = #tpu.dot_dimension_numbers<[1], [1], [0], [0], [0, 0, 1, 0], [], []>} : vector<16x8xbf16>, vector<8x8xbf16>, vector<16x8xf32> -> vector<16x8xf32>
    %68 = arith.addf %67, %34 : vector<16x8xf32>
    %cst_20 = arith.constant dense<0xFF800000> : vector<16xf32>
    %69 = vector.multi_reduction <maximumf>, %68, %cst_20 [1] : vector<16x8xf32> to vector<16xf32>
    %70 = vector.shape_cast %69 : vector<16xf32> to vector<16x1xf32>
    %71 = vector.broadcast %70 : vector<16x1xf32> to vector<16x8xf32>
    %72 = arith.subf %68, %71 : vector<16x8xf32>
    %73 = math.exp %72 : vector<16x8xf32>
    %cst_21 = arith.constant dense<0.000000e+00> : vector<16xf32>
    %74 = vector.multi_reduction <add>, %73, %cst_21 [1] : vector<16x8xf32> to vector<16xf32>
    %75 = vector.shape_cast %74 : vector<16xf32> to vector<16x1xf32>
    %76 = tpu.reciprocal %75 {approx = true} : vector<16x1xf32> -> vector<16x1xf32>
    %77 = vector.broadcast %76 : vector<16x1xf32> to vector<16x8xf32>
    %78 = arith.mulf %73, %77 : vector<16x8xf32>
    %79 = arith.truncf %78 : vector<16x8xf32> to vector<16x8xbf16>
    %cst_22 = arith.constant dense<0.000000e+00> : vector<16x8xf32>
    %80 = tpu.matmul %79, %62, %cst_22 {dimension_numbers = #tpu.dot_dimension_numbers<[1], [0], [0], [1], [0, 0, 1, 1], [], []>} : vector<16x8xbf16>, vector<8x8xbf16>, vector<16x8xf32> -> vector<16x8xf32>
    %81 = vector.extract_strided_slice %80 {offsets = [0, 0], sizes = [8, 8], strides = [1, 1]} : vector<16x8xf32> to vector<8x8xf32>
    %82 = vector.extract_strided_slice %80 {offsets = [8, 0], sizes = [8, 8], strides = [1, 1]} : vector<16x8xf32> to vector<8x8xf32>
    %83 = tpu.concatenate %57, %58, %81, %82 in 1 : vector<8x8xf32>, vector<8x8xf32>, vector<8x8xf32>, vector<8x8xf32> -> vector<8x32xf32>
    %84 = arith.truncf %83 : vector<8x32xf32> to vector<8x32xbf16>
    %c0_23 = arith.constant 0 : index
    %c0_24 = arith.constant 0 : index
    %85 = vector.load %arg6[%c0_23, %c0_24] : memref<32x32xbf16, #tpu.memory_space<vmem>>, vector<32x32xbf16>
    %cst_25 = arith.constant dense<0.000000e+00> : vector<8x32xf32>
    %86 = tpu.matmul %84, %85, %cst_25 {dimension_numbers = #tpu.dot_dimension_numbers<[1], [0], [0], [1], [0, 0, 1, 1], [], []>} : vector<8x32xbf16>, vector<32x32xbf16>, vector<8x32xf32> -> vector<8x32xf32>
    %87 = arith.addf %1, %86 : vector<8x32xf32>
    %c0_26 = arith.constant 0 : index
    %c0_27 = arith.constant 0 : index
    %88 = vector.load %arg10[%c0_26, %c0_27] : memref<1x32xf32, #tpu.memory_space<vmem>>, vector<1x32xf32>
    %89 = arith.mulf %87, %87 : vector<8x32xf32>
    %cst_28 = arith.constant dense<0.000000e+00> : vector<8xf32>
    %90 = vector.multi_reduction <add>, %89, %cst_28 [1] : vector<8x32xf32> to vector<8xf32>
    %91 = vector.shape_cast %90 : vector<8xf32> to vector<8x1xf32>
    %cst_29 = arith.constant 3.200000e+01 : f32
    %92 = vector.broadcast %cst_29 : f32 to vector<8x1xf32>
    %93 = arith.divf %91, %92 : vector<8x1xf32>
    %cst_30 = arith.constant 9.99999974E-6 : f32
    %94 = vector.broadcast %cst_30 : f32 to vector<8x1xf32>
    %95 = arith.addf %93, %94 : vector<8x1xf32>
    %96 = math.rsqrt %95 : vector<8x1xf32>
    %97 = vector.broadcast %96 : vector<8x1xf32> to vector<8x32xf32>
    %98 = arith.mulf %87, %97 : vector<8x32xf32>
    %99 = vector.broadcast %88 : vector<1x32xf32> to vector<8x32xf32>
    %100 = arith.mulf %98, %99 : vector<8x32xf32>
    %101 = arith.truncf %100 : vector<8x32xf32> to vector<8x32xbf16>
    %c0_31 = arith.constant 0 : index
    %c0_32 = arith.constant 0 : index
    %102 = vector.load %arg7[%c0_31, %c0_32] : memref<32x128xbf16, #tpu.memory_space<vmem>>, vector<32x128xbf16>
    %cst_33 = arith.constant dense<0.000000e+00> : vector<8x128xf32>
    %103 = tpu.matmul %101, %102, %cst_33 {dimension_numbers = #tpu.dot_dimension_numbers<[1], [0], [0], [1], [0, 0, 1, 1], [], []>} : vector<8x32xbf16>, vector<32x128xbf16>, vector<8x128xf32> -> vector<8x128xf32>
    %104 = vector.extract_strided_slice %103 {offsets = [0, 0], sizes = [8, 64], strides = [1, 1]} : vector<8x128xf32> to vector<8x64xf32>
    %105 = vector.extract_strided_slice %103 {offsets = [0, 64], sizes = [8, 64], strides = [1, 1]} : vector<8x128xf32> to vector<8x64xf32>
    %106 = arith.negf %104 : vector<8x64xf32>
    %107 = math.exp %106 : vector<8x64xf32>
    %cst_34 = arith.constant 1.000000e+00 : f32
    %108 = vector.broadcast %cst_34 : f32 to vector<8x64xf32>
    %109 = arith.addf %108, %107 : vector<8x64xf32>
    %110 = arith.divf %108, %109 : vector<8x64xf32>
    %111 = arith.mulf %104, %110 : vector<8x64xf32>
    %112 = arith.mulf %111, %105 : vector<8x64xf32>
    %113 = arith.truncf %112 : vector<8x64xf32> to vector<8x64xbf16>
    %c0_35 = arith.constant 0 : index
    %c0_36 = arith.constant 0 : index
    %114 = vector.load %arg8[%c0_35, %c0_36] : memref<64x32xbf16, #tpu.memory_space<vmem>>, vector<64x32xbf16>
    %cst_37 = arith.constant dense<0.000000e+00> : vector<8x32xf32>
    %115 = tpu.matmul %113, %114, %cst_37 {dimension_numbers = #tpu.dot_dimension_numbers<[1], [0], [0], [1], [0, 0, 1, 1], [], []>} : vector<8x64xbf16>, vector<64x32xbf16>, vector<8x32xf32> -> vector<8x32xf32>
    %116 = arith.addf %87, %115 : vector<8x32xf32>
    %c0_38 = arith.constant 0 : index
    %c0_39 = arith.constant 0 : index
    %c0_40 = arith.constant 0 : index
    %117 = vector.load %arg11[%c0_38, %c0_39, %c0_40] : memref<1x8x32xf32, #tpu.memory_space<vmem>>, vector<1x8x32xf32>
    %118 = vector.shape_cast %117 : vector<1x8x32xf32> to vector<8x32xf32>
    %119 = vector.shape_cast %116 : vector<8x32xf32> to vector<1x8x32xf32>
    tpu.vector_store %arg11[%c0_38, %c0_39, %c0_40], %119 {strides = array<i32>} : memref<1x8x32xf32, #tpu.memory_space<vmem>>, vector<1x8x32xf32>,
    return
  }
  func.func @transform_0(%arg0: i32) -> (i32, i32, i32) {
    %c0_i32 = arith.constant 0 : i32
    %c0_i32_0 = arith.constant 0 : i32
    %c0_i32_1 = arith.constant 0 : i32
    return %arg0, %c0_i32, %c0_i32_0 : i32, i32, i32
  }
  func.func @transform_1(%arg0: i32) -> (i32, i32) {
    %c0_i32 = arith.constant 0 : i32
    %c0_i32_0 = arith.constant 0 : i32
    %c0_i32_1 = arith.constant 0 : i32
    return %c0_i32, %c0_i32_0 : i32, i32
  }
  func.func @transform_2(%arg0: i32) -> (i32, i32) {
    %c0_i32 = arith.constant 0 : i32
    %c0_i32_0 = arith.constant 0 : i32
    %c0_i32_1 = arith.constant 0 : i32
    return %c0_i32, %c0_i32_0 : i32, i32
  }
  func.func @transform_3(%arg0: i32) -> (i32, i32) {
    %c0_i32 = arith.constant 0 : i32
    %c0_i32_0 = arith.constant 0 : i32
    %c0_i32_1 = arith.constant 0 : i32
    return %c0_i32, %c0_i32_0 : i32, i32
  }
  func.func @transform_4(%arg0: i32) -> (i32, i32) {
    %c0_i32 = arith.constant 0 : i32
    %c0_i32_0 = arith.constant 0 : i32
    %c0_i32_1 = arith.constant 0 : i32
    return %c0_i32, %c0_i32_0 : i32, i32
  }
  func.func @transform_5(%arg0: i32) -> (i32, i32) {
    %c0_i32 = arith.constant 0 : i32
    %c0_i32_0 = arith.constant 0 : i32
    %c0_i32_1 = arith.constant 0 : i32
    return %c0_i32, %c0_i32_0 : i32, i32
  }
  func.func @transform_6(%arg0: i32) -> (i32, i32) {
    %c0_i32 = arith.constant 0 : i32
    %c0_i32_0 = arith.constant 0 : i32
    %c0_i32_1 = arith.constant 0 : i32
    return %c0_i32, %c0_i32_0 : i32, i32
  }
  func.func @transform_7(%arg0: i32) -> (i32, i32) {
    %c0_i32 = arith.constant 0 : i32
    %c0_i32_0 = arith.constant 0 : i32
    %c0_i32_1 = arith.constant 0 : i32
    return %c0_i32, %c0_i32_0 : i32, i32
  }
  func.func @transform_8(%arg0: i32) -> (i32, i32) {
    %c0_i32 = arith.constant 0 : i32
    %c0_i32_0 = arith.constant 0 : i32
    %c0_i32_1 = arith.constant 0 : i32
    return %c0_i32, %c0_i32_0 : i32, i32
  }
  func.func @transform_9(%arg0: i32) -> (i32, i32) {
    %c0_i32 = arith.constant 0 : i32
    %c0_i32_0 = arith.constant 0 : i32
    %c0_i32_1 = arith.constant 0 : i32
    return %c0_i32, %c0_i32_0 : i32, i32
  }
  func.func @transform_10(%arg0: i32) -> (i32, i32, i32) {
    %c0_i32 = arith.constant 0 : i32
    %c0_i32_0 = arith.constant 0 : i32
    %c0_i32_1 = arith.constant 0 : i32
    return %arg0, %c0_i32, %c0_i32_0 : i32, i32, i32
  }
}

</mosaic_0001>

<bundles_post_ra>
// kernel: tpu_custom_call.1
= control target key start
LH: loop header
LB: loop body
LE: loop exit
PB: predicated region body
PF: predicated region fallthrough
CT: control target
= control target key end

     0   :  { %s1631_s0 = inlined_call_operand.vmem [shape: f32[2,8,32], index: 0, kind: input, shape index: {}]   ;;  %s1632_s1 = inlined_call_operand.hbm [shape: f32[8,32], index: 1, kind: input, shape index: {}]   ;;  %s1633_s2 = inlined_call_operand.hbm [shape: f32[8,32], index: 2, kind: input, shape index: {}]   ;;  %s1634_s3 = inlined_call_operand.hbm [shape: f32[8,8], index: 3, kind: input, shape index: {}]   ;;  %s1635_s4 = inlined_call_operand.vmem [shape: bf16[32,112], index: 4, kind: input, shape index: {}]   ;;  %s1636_s5 = inlined_call_operand.vmem [shape: bf16[32,32], index: 5, kind: input, shape index: {}]   ;;  %s1637_s6 = inlined_call_operand.hbm [shape: bf16[32,128], index: 6, kind: input, shape index: {}]   ;;  %s1638_s7 = inlined_call_operand.vmem [shape: bf16[64,32], index: 7, kind: input, shape index: {}]   ;;  %s1639_s8 = inlined_call_operand.vmem [shape: f32[1,32], index: 8, kind: input, shape index: {}]   ;;  %s1640_s9 = inlined_call_operand.vmem [shape: f32[1,32], index: 9, kind: input, shape index: {}]   ;;  %s1641_s10 = inlined_call_operand.hbm [shape: f32[2,8,32], index: 10, kind: output, shape index: {}]  }
   0x1   :  { %1643 = sst [smem:[#allocation17_spill]] %s1632_s1 }
   0x2   :  { %1644 = sst [smem:[#allocation18_spill]] %s1633_s2 }
   0x3   :  { %1645 = sst [smem:[#allocation19_spill]] %s1634_s3 }
   0x4   :  { %15 = vsyncpa [#allocation3], 0 }
   0x5   :  { %16 = vsyncpa [#allocation6], 0 }
   0x6   :  { %17 = vsyncpa [#allocation9], 0 }
   0x7   :  { %18 = vsyncpa [#allocation4], 0 }
   0x8   :  { %20 = vsyncpa [#allocation4 + $0x1], 0  ;;  %s1424_s13 = smov 0   ;;  %s1426_s14 = smov 0  }
   0x9   :  { %s1428_s15 = smov 0   ;;  %s1430_s16 = smov 0  }
   0xa LB: > { %1646 = sst [smem:[#allocation15_spill]] %s1345_s15  ;;  %s1445_s17 = sadd.s32 4294967295, %s1349_s16   ;;  %s1349_s16 = sphi %s1430_s16, %s1659_s16   ;;  %s1345_s15 = sphi %s1428_s15, %s1656_s15   ;;  %s1341_s14 = sphi %s1426_s14, %s1658_s14   ;;  %s1337_s13 = sphi %s1424_s13, %s1657_s13  }
   0xb   : > { %s956_s18 = sadd.s32 4294967294, %s1349_s16   ;;  %s1449_s19 = sadd.s32 1, %s1349_s16  }
   0xc   : > { %s248_s20 = sadd.s32 1, %s1345_s15  ;;  %s245_s21 = ssub.s32 %s1349_s16, %s1449_s19 }
   0xd   : > { %p258_p0 = scmp.ne.s32.totalorder %s1345_s15, %s1341_s14  ;;  %p246_p1 = scmp.eq.s32.totalorder %s245_s21, 0 }
   0xe   : > { %p259_p2 = scmp.eq.s32.totalorder %s1445_s17, 1  ;;  %p264_p3 = scmp.ne.s32.totalorder %s1341_s14, %s1337_s13 }
   0xf   : > { %p265_p4 = scmp.eq.s32.totalorder %s956_s18, 1  ;;  %p957_p7 = scmp.ge.s32.totalorder %s1349_s16, 1 }
  0x10   : > { %s1460_s22 = scalar_select %p246_p1, %s1345_s15, %s248_s20  }
  0x11   : > { %p1462_p5 = por %p259_p2, %p258_p0  ;;  %p1466_p6 = por %p265_p4, %p264_p3 }
  0x12   : > { %1647 = sst [smem:[#allocation16_spill]] %s1460_s22  ;;  %p272_p8 = scmp.lt.s32.totalorder %s1349_s16, 3 }
  0x13   : > { %p1068_p9 = scmp.eq.s32.totalorder %s1445_s17, 0  ;;  %s1651_s2 = sld [smem:[#allocation18_spill]] }
  0x14   : > { %p1473_p10 = pnand %p957_p7, %p272_p8  ;;  %s1351_s29 = smov [#allocation5]  }
  0x15   : > { %s298_s30 = sshll.u32 %s1351_s29, 4  ;;  %s1652_s1 = sld [smem:[#allocation17_spill]]  ;;  %s299_s30 = int_to_ptr.vmem [resolvable:$true] %s298_s30 }
  0x16   : > { %p1051_p11 = pneg %p1473_p10  ;;  %s1654_s3 = sld [smem:[#allocation19_spill]] }
  0x17   : > { %s1353_s22 = smov [#allocation7]   ;;  %s1354_s21 = smov [#allocation8]  }
  0x18   : > { %p1487_p12 = pnand %p1068_p9, %p1051_p11  ;;  %s310_s15 = sshll.u32 %s1353_s22, 4  ;;  %s311_s15 = int_to_ptr.vmem [resolvable:$true] %s310_s15 }
  0x19   : > { %s296_s28 = sshll.u32 %s1651_s2, 4  ;;  %s1352_s2 = smov [#allocation2]   ;;  %s297_s28 = int_to_ptr.hbm [resolvable:$true] %s296_s28 }
  0x1a   : > { %s286_s29 = sshll.u32 %s1352_s2, 4  ;;  %s327_s26 = sshll.u32 %s1354_s21, 4  ;;  %s287_s29 = int_to_ptr.vmem [resolvable:$true] %s286_s29  ;;  %s328_s26 = int_to_ptr.vmem [resolvable:$true] %s327_s26 }
  0x1b   : > { %s284_s18 = sshll.u32 %s1652_s1, 4  ;;  %s325_s1 = sshll.u32 %s1637_s6, 4  ;;  %s285_s18 = int_to_ptr.hbm [resolvable:$true] %s284_s18  ;;  %s326_s1 = int_to_ptr.hbm [resolvable:$true] %s325_s1 }
  0x1c   : > { %s308_s27 = sshll.u32 %s1654_s3, 4  ;;  %s1355_s2 = smov 64   ;;  %s309_s27 = int_to_ptr.hbm [resolvable:$true] %s308_s27 }
  0x1d   : > { %1057 = dma.hbm_to_vmem [thread:$0]  (!%p1487_p12), %s297_s28, 128, %s299_s30, [#allocation6]  }
  0x1e   : > { %1054 = dma.hbm_to_vmem [thread:$0]  (!%p1487_p12), %s285_s18, 128, %s287_s29, [#allocation3]  }
  0x1f   : > { %1060 = dma.hbm_to_vmem [thread:$0]  (!%p1487_p12), %s309_s27, 128, %s311_s15, [#allocation6]  }
  0x20   : > { %s1356_s3 = smov 4   ;;  %359 = sbr.rel (%p1473_p10) target bundleno = 1965 (0x7ad), region = 60 }
  0x21   : > { %1063 = dma.hbm_to_vmem [thread:$0]  (!%p1487_p12), %s326_s1, 256, %s328_s26, [#allocation9], %s1355_s2, %s1355_s2, %s1356_s3  }
  0x25   : > { %1320 = dma.done.wait (%p1068_p9), [#allocation3], 128  }
  0x26   : > { %1322 = vsyncadd (%p1068_p9), [#allocation3], 4294967168 }
  0x27   : > { %1324 = dma.done.wait (%p1068_p9), [#allocation6], 256  }
  0x28   : > { %1326 = vsyncadd (%p1068_p9), [#allocation6], 4294967040 }
  0x29   : > { %1328 = dma.done.wait (%p1068_p9), [#allocation9], 256  }
  0x2a   : > { %1330 = vsyncadd (%p1068_p9), [#allocation9], 4294967040  ;;  %p412_p13 = scmp.lt.s32.totalorder %s1445_s17, 1  ;;  %vm423_vm0 = vcmask 261120   ;;  %v1357_v3 = vmov 32.0   ;;  %v1024_v7 = vld [vmem:[%s1635_s4 + $0x8] sm:$0xff] }
  0x2b   : > { %1129 = vrcp.f32 %v1357_v3  ;;  %477 = vmatpush.bf16.msra.mxu0 %v1024_v7  ;;  %v1023_v9 = vld [vmem:[%s1635_s4] sm:$0xff]  ;;  %v419_v11 = vld [vmem:[#allocation5] sm:$0xff]  ;;  %s1358_s27 = smov 96   ;;  %s1359_s29 = smov 64   ;;  %vm519_vm5 = vcmask 64512   ;;  %v420_v49 = vld [vmem:[#allocation7] sm:$0xff] }
  0x2c   : > { %s413_s1 = scalar_select %p412_p13, %s1445_s17, 1  ;;  %v418_v12 = vld [vmem:[#allocation2] sm:$0xff]  ;;  %500 = vrot.lane.b32.xlu1 %v419_v11, %s1358_s27  ;;  %vm569_vm6 = vcmask 1043456   ;;  %vm670_vm7 = vcmask 130048   ;;  %vm672_vm8 = vcmask 195584  }
  0x2d   : > { %s1360_s11 = smov 32   ;;  %v1127_v23 = vld [vmem:[%s1639_s8] ss:$0 sm:$0xff]  ;;  %s1361_s26 = smov 120  }
  0x2e   : > { %s969_s3 = sshll.u32 %s413_s1, 3  ;;  %496 = vrot.lane.b32.xlu2 %v418_v12, %s1360_s11  ;;  %s1362_s2 = smov 88  }
  0x2f   : > { %s415_s25 = scalar_lea.vmem %s1631_s0, %s969_s3  ;;  %478 = vmatpush.bf16.msra.mxu0 %v1023_v9  ;;  %s1363_s1 = smov 112  }
  0x30   : > { %v1524_v0 = vld [vmem:[%s415_s25] sm:$0xff]  ;;  %s1364_s3 = smov 80   ;;  %s1365_s15 = smov 72  }
  0x31   : > { %v422_v1 = vmul.f32 %v1524_v0, %v1524_v0  ;;  %v1130_v4 = vpop.eup %1129  ;;  %s1366_s22 = smov 8   ;;  %s1367_s25 = smov 16  }
  0x32   : > { %v428_v5 = vmul.f32 32.0, %v1130_v4  ;;  %vm432_vm1 = vweird.f32 %v1130_v4  ;;  %s1368_s28 = smov 24  }
  0x33   : > { %v424_v2 = vsel %vm423_vm0, %v422_v1, 0.0 }
  0x34   : > { %425 = vadd.xlane.f32.xlu0 %v424_v2  ;;  %v429_v6 = vsub.f32 1.0, %v428_v5 }
  0x36   : > { %v430_v8 = vmul.f32 %v1130_v4, %v429_v6 }
  0x38   : > { %v431_v10 = vadd.f32 %v1130_v4, %v430_v8 }
  0x3a   : > { %v1535_v13 = vsel %vm432_vm1, %v1130_v4, %v431_v10  ;;  %vm821_vm1 = vcmask 523264  }
  0x48   : > { %486 = vrot.lane.b32.xlu0 %v419_v11, %s1359_s29 }
  0x88   : > { %v497_v34 = vpop.permute.xlu2 %496 }
  0x9e   : > { %v501_v28 = vpop.permute.xlu1 %500 }
  0xa7   : > { %v426_v14 = vpop.xlane.xlu0 %425 }
  0xa8   : > { %v434_v15 = vmul.f32 %v1535_v13, %v426_v14 }
  0xaa   : > { %v435_v16 = vadd.f32 1e-05, %v434_v15 }
  0xac   : > { %1131 = vrsqrt.f32 %v435_v16  ;;  %vm442_vm3 = vweird.f32 %v435_v16 }
  0xb2   : > { %v1132_v17 = vpop.eup %1131 }
  0xb3   : > { %v437_v18 = vmul.f32 %v1132_v17, %v435_v16  ;;  %vm443_vm2 = vweird.f32 %v1132_v17 }
  0xb4   : > { %vm444_vm4 = vmor %vm442_vm3, %vm443_vm2 }
  0xb5   : > { %v438_v19 = vmul.f32 %v1132_v17, %v437_v18 }
  0xb7   : > { %v439_v20 = vmul.f32 0.5, %v438_v19 }
  0xb9   : > { %v440_v21 = vsub.f32 1.5, %v439_v20 }
  0xba   : > { %v487_v29 = vpop.permute.xlu0 %486 }
  0xbb   : > { %v441_v22 = vmul.f32 %v1132_v17, %v440_v21 }
  0xbd   : > { %v445_v24 = vsel %vm444_vm4, %v1132_v17, %v441_v22 }
  0xbe   : > { %v446_v25 = vmul.f32 %v445_v24, %v1524_v0 }
  0xc0   : > { %v450_v26 = vmul.f32 %v1127_v23, %v446_v25 }
  0xc2   : > { %v451_v27 = vpack.c.bf16 %v450_v26, %v450_v26 }
  0xc4   : > { %978 = vmatmul.msk.bf16.vlgmr.msra.gmra.mxu0 %vm423_vm0, %v451_v27 }
 0x141   : > { %v480_v30 = vpop.f32.mrf.mxu0 }
 0x142   : > { %v489_v31 = vmul.f32 %v487_v29, %v480_v30  ;;  %v503_v32 = vmul.f32 %v501_v28, %v480_v30  ;;  %v499_v35 = vmul.f32 %v497_v34, %v480_v30  ;;  %v484_v39 = vmul.f32 %v480_v30, %v418_v12 }
 0x143   : > { %v510_v3 = vpack.c.bf16 %v480_v30, %v480_v30 }
 0x144   : > { %505 = vrot.lane.b32.xlu2 %v503_v32, %s1359_s29  ;;  %491 = vrot.lane.b32.xlu1 %v489_v31, %s1359_s29 }
 0x149   : > { %v482_v33 = vpop.f32.mrf.mxu0 }
 0x19e   : > { %v506_v36 = vpop.permute.xlu2 %505 }
 0x19f   : > { %v508_v37 = vadd.f32 %v506_v36, %v499_v35 }
 0x1a1   : > { %v509_v38 = vpack.c.bf16 %v508_v37, %v508_v37 }
 0x1a3   : > { %517 = vrot.lane.b32.xlu2 %v509_v38, %s1358_s27 }
 0x1b6   : > { %v492_v40 = vpop.permute.xlu1 %491 }
 0x1b7   : > { %v494_v41 = vadd.f32 %v492_v40, %v484_v39 }
 0x1b9   : > { %512 = vrot.lane.b32.xlu1 %v494_v41, %s1361_s26 }
 0x1c1   : > { %590 = vrot.lane.b32.xlu1 %v509_v38, %s1362_s2 }
 0x1fd   : > { %v518_v42 = vpop.permute.xlu2 %517 }
 0x1fe   : > { %v524_v43 = vsel %vm519_vm5, %v518_v42, 0 }
 0x1ff   : > { %533 = vmatpush.bf16.xpose.msra.mxu1 %v524_v43  ;;  %v1026_v43 = vld [vmem:[%s1636_s5 + $0x8] sm:$0xff] }
 0x200   : > { %700 = vmatpush.bf16.msrb.mxu0 %v1026_v43 }
 0x22b   : > { %v513_v44 = vpop.permute.xlu1 %512 }
 0x22c   : > { %v515_v45 = vpack.c.bf16 %v513_v44, %v494_v41  ;;  %v1025_v44 = vld [vmem:[%s1636_s5] sm:$0xff] }
 0x22d   : > { %701 = vmatpush.bf16.msrb.mxu0 %v1025_v44 }
 0x22e   : > { %588 = vrot.lane.b32.xlu2 %v515_v45, %s1363_s1  ;;  %979 = vmatmul.msk.bf16.vlgmr.msra.gmra.mxu1 %vm519_vm5, %v515_v45 }
 0x233   : > { %v591_v46 = vpop.permute.xlu1 %590 }
 0x234   : > { %v596_v47 = vsel %vm519_vm5, %v591_v46, 0 }
 0x235   : > { %605 = vmatpush.bf16.xpose.msra.mxu3 %v596_v47 }
 0x288   : > { %v589_v48 = vpop.permute.xlu2 %588 }
 0x289   : > { %981 = vmatmul.msk.bf16.vlgmr.msra.gmra.mxu3 %vm519_vm5, %v589_v48 }
 0x2ab   : > { %v535_v50 = vpop.f32.mrf.mxu1 }
 0x2ac   : > { %v536_v51 = vadd.f32 %v535_v50, %v420_v49 }
 0x2ae   : > { %v540_v52 = vsel %vm519_vm5, %v536_v51, -inf }
 0x2af   : > { %541 = vmax.xlane.f32.xlu0 %v540_v52 }
 0x2b3   : > { %v537_v53 = vpop.f32.mrf.mxu1 }
 0x2b4   : > { %v538_v54 = vadd.f32 %v537_v53, %v420_v49 }
 0x2b6   : > { %v543_v55 = vsel %vm519_vm5, %v538_v54, -inf }
 0x2b7   : > { %544 = vmax.xlane.f32.xlu1 %v543_v55 }
 0x30c   : > { %v607_v56 = vpop.f32.mrf.mxu3 }
 0x30d   : > { %v608_v57 = vadd.f32 %v607_v56, %v420_v49 }
 0x30f   : > { %v612_v58 = vsel %vm519_vm5, %v608_v57, -inf }
 0x310   : > { %613 = vmax.xlane.f32.xlu2 %v612_v58  ;;  %v1027_v58 = vld [vmem:[#allocation8] sm:$0xff] }
 0x314   : > { %v609_v59 = vpop.f32.mrf.mxu3 }
 0x315   : > { %v610_v60 = vadd.f32 %v609_v59, %v420_v49 }
 0x317   : > { %v615_v61 = vsel %vm519_vm5, %v610_v60, -inf }
 0x318   : > { %616 = vmax.xlane.f32.xlu0 %v615_v61 }
 0x322   : > { %v542_v62 = vpop.xlane.xlu0 %541 }
 0x323   : > { %v546_v63 = vsub.f32 %v536_v51, %v542_v62 }
 0x325   : > { %v548_v1 = vmul.f32 1.442695, %v546_v63 }
 0x327   : > { %1133 = vpow2.f32 %v548_v1 }
 0x32a   : > { %v545_v2 = vpop.xlane.xlu1 %544 }
 0x32b   : > { %v547_v4 = vsub.f32 %v538_v54, %v545_v2 }
 0x32c   : > { %564 = vrot.lane.b32.xlu0 %v510_v3, %s1364_s3 }
 0x32d   : > { %v1134_v5 = vpop.eup %1133  ;;  %v550_v6 = vmul.f32 1.442695, %v547_v4  ;;  %v1128_v4 = vld [vmem:[%s1640_s9] ss:$0 sm:$0xff] }
 0x32e   : > { %v552_v7 = vsel %vm519_vm5, %v1134_v5, 0.0 }
 0x32f   : > { %1135 = vpow2.f32 %v550_v6  ;;  %553 = vadd.xlane.f32.xlu2 %v552_v7 }
 0x335   : > { %v1136_v8 = vpop.eup %1135 }
 0x336   : > { %v555_v9 = vsel %vm519_vm5, %v1136_v8, 0.0 }
 0x337   : > { %556 = vadd.xlane.f32.xlu1 %v555_v9  ;;  %v1031_v9 = vld [vmem:[%s1638_s7 + $0x10] sm:$0xff] }
 0x383   : > { %v614_v10 = vpop.xlane.xlu2 %613 }
 0x384   : > { %v618_v11 = vsub.f32 %v608_v57, %v614_v10  ;;  %v1028_v57 = vld [vmem:[#allocation8 + $0x8] sm:$0xff]  ;;  %v1030_v10 = vld [vmem:[%s1638_s7 + $0x8] sm:$0xff] }
 0x385   : > { %756 = vmatpush.bf16.msrb.mxu1 %v1028_v57 }
 0x386   : > { %v620_v12 = vmul.f32 1.442695, %v618_v11 }
 0x388   : > { %1137 = vpow2.f32 %v620_v12 }
 0x389   : > { %757 = vmatpush.bf16.msrb.mxu1 %v1027_v58 }
 0x38b   : > { %v617_v14 = vpop.xlane.xlu0 %616 }
 0x38c   : > { %v619_v15 = vsub.f32 %v610_v60, %v617_v14 }
 0x38e   : > { %v1138_v16 = vpop.eup %1137  ;;  %v622_v17 = vmul.f32 1.442695, %v619_v15 }
 0x38f   : > { %v624_v18 = vsel %vm519_vm5, %v1138_v16, 0.0 }
 0x390   : > { %1139 = vpow2.f32 %v622_v17  ;;  %625 = vadd.xlane.f32.xlu2 %v624_v18  ;;  %v1029_v17 = vld [vmem:[%s1638_s7] sm:$0xff] }
 0x396   : > { %v1140_v19 = vpop.eup %1139 }
 0x397   : > { %v627_v20 = vsel %vm519_vm5, %v1140_v19, 0.0 }
 0x398   : > { %628 = vadd.xlane.f32.xlu1 %v627_v20 }
 0x39e   : > { %v565_v21 = vpop.permute.xlu0 %564 }
 0x39f   : > { %v571_v22 = vsel %vm569_vm6, %v565_v21, 0 }
 0x3a0   : > { %580 = vmatpush.bf16.msra.mxu2 %v571_v22 }
 0x3a2   : > { %v554_v23 = vpop.xlane.xlu2 %553 }
 0x3a3   : > { %1141 = vrcp.f32 %v554_v23 }
 0x3a8   : > { %635 = vrot.lane.b32.xlu2 %v510_v3, %s1365_s15  ;;  %s1295_s15 = scalar_lea.hbm %s1641_s10, 16 }
 0x3a9   : > { %v1142_v25 = vpop.eup %1141 }
 0x3aa   : > { %v557_v24 = vpop.xlane.xlu1 %556  ;;  %v560_v27 = vmul.f32 %v1142_v25, %v1134_v5 }
 0x3ab   : > { %1143 = vrcp.f32 %v557_v24 }
 0x3b1   : > { %v1144_v26 = vpop.eup %1143 }
 0x3b2   : > { %v561_v28 = vmul.f32 %v1144_v26, %v1136_v8  ;;  %v1032_v8 = vld [vmem:[%s1638_s7 + $0x18] sm:$0xff] }
 0x3b3   : > { %829 = vmatpush.bf16.msrb.mxu3 %v1032_v8 }
 0x3b4   : > { %v562_v29 = vpack.c.bf16 %v561_v28, %v560_v27 }
 0x3b6   : > { %980 = vmatmul.msk.bf16.vlgmr.msra.gmra.mxu2 %vm519_vm5, %v562_v29 }
 0x3b7   : > { %830 = vmatpush.bf16.msrb.mxu3 %v1031_v9 }
 0x3bb   : > { %831 = vmatpush.bf16.msrb.mxu3 %v1030_v10 }
 0x3bf   : > { %832 = vmatpush.bf16.msrb.mxu3 %v1029_v17 }
 0x403   : > { %v626_v30 = vpop.xlane.xlu2 %625 }
 0x404   : > { %1145 = vrcp.f32 %v626_v30 }
 0x40a   : > { %v1146_v34 = vpop.eup %1145 }
 0x40b   : > { %v636_v31 = vpop.permute.xlu2 %635  ;;  %v629_v32 = vpop.xlane.xlu1 %628  ;;  %v632_v36 = vmul.f32 %v1146_v34, %v1138_v16 }
 0x40c   : > { %1147 = vrcp.f32 %v629_v32  ;;  %v641_v33 = vsel %vm569_vm6, %v636_v31, 0 }
 0x40d   : > { %650 = vmatpush.bf16.msrb.mxu2 %v641_v33 }
 0x412   : > { %v1148_v35 = vpop.eup %1147 }
 0x413   : > { %v633_v37 = vmul.f32 %v1148_v35, %v1140_v19 }
 0x415   : > { %v634_v38 = vpack.c.bf16 %v633_v37, %v632_v36 }
 0x417   : > { %982 = vmatmul.msk.bf16.vlgmr.msrb.gmra.mxu2 %vm519_vm5, %v634_v38 }
 0x439   : > { %v582_v39 = vpop.f32.mrf.mxu2 }
 0x441   : > { %v584_v40 = vpop.f32.mrf.mxu2 }
 0x442   : > { %658 = vrot.lane.b32.xlu1 %v584_v40, %s1366_s22 }
 0x49a   : > { %v652_v41 = vpop.f32.mrf.mxu2 }
 0x49b   : > { %662 = vrot.lane.b32.xlu0 %v652_v41, %s1367_s25 }
 0x4a2   : > { %v654_v42 = vpop.f32.mrf.mxu2 }
 0x4a3   : > { %666 = vrot.lane.b32.xlu0 %v654_v42, %s1368_s28  ;;  %s1020_s28 = sshll.u32 %s1445_s17, 3 }
 0x4a4   : > { %s851_s27 = scalar_lea.hbm %s1641_s10, %s1020_s28 }
 0x4a5   : > { %s855_s21 = sshll.u32 %s851_s27, 4  ;;  %s856_s21 = int_to_ptr.hbm [resolvable:$true] %s855_s21 }
 0x4a6   : > { %s1289_s2 = sshra.s32 %s856_s21, 4  ;;  %s1290_s2 = int_to_ptr.hbm [resolvable:$true] %s1289_s2 }
 0x4a7   : > { %s1291_s17 = scalar_lea.hbm %s1290_s2, 8  ;;  %p1296_p3 = scmp.lt.s32.totalorder %s1290_s2, %s1641_s10 }
 0x4a8   : > { %p1292_p0 = scmp.ne.s32.totalorder %s1290_s2, %s1291_s17  ;;  %p1297_p4 = scmp.lt.s32.totalorder %s1295_s15, %s1291_s17 }
 0x4aa   : > { %p1293_p1 = pnand %p1292_p0, %p1462_p5  ;;  %p1298_p7 = por %p1297_p4, %p1296_p3 }
 0x4ac   : > { %p1294_p2 = pneg %p1293_p1 }
 0x4ae   : > { %p1299_p8 = pnand %p1298_p7, %p1294_p2 }
 0x4b4   : > { %v659_v46 = vpop.permute.xlu1 %658 }
 0x4b5   : > { %v669_v47 = vsel %vm519_vm5, %v582_v39, %v659_v46 }
 0x50d   : > { %v663_v45 = vpop.permute.xlu0 %662 }
 0x50e   : > { %v671_v48 = vsel %vm670_vm7, %v669_v47, %v663_v45 }
 0x515   : > { %v667_v49 = vpop.permute.xlu0 %666 }
 0x516   : > { %v673_v50 = vsel %vm672_vm8, %v671_v48, %v667_v49 }
 0x517   : > { %v674_v51 = vpack.c.bf16 %v673_v50, %v673_v50 }
 0x519   : > { %991 = vmatmul.msk.bf16.vlgmr.msrb.gmra.mxu0 %vm423_vm0, %v674_v51 }
 0x596   : > { %v703_v52 = vpop.f32.mrf.mxu0 }
 0x597   : > { %v1573_v53 = vadd.f32 %v703_v52, %v1524_v0 }
 0x599   : > { %v709_v54 = vmul.f32 %v1573_v53, %v1573_v53 }
 0x59b   : > { %v710_v55 = vsel %vm423_vm0, %v709_v54, 0.0 }
 0x59c   : > { %711 = vadd.xlane.f32.xlu2 %v710_v55 }
 0x59e   : > { %v705_v56 = vpop.f32.mrf.mxu0 }
 0x60f   : > { %v712_v59 = vpop.xlane.xlu2 %711 }
 0x610   : > { %v713_v60 = vmul.f32 %v712_v59, %v1535_v13 }
 0x612   : > { %v714_v61 = vadd.f32 1e-05, %v713_v60 }
 0x614   : > { %1149 = vrsqrt.f32 %v714_v61  ;;  %vm721_vm10 = vweird.f32 %v714_v61 }
 0x61a   : > { %v1150_v62 = vpop.eup %1149 }
 0x61b   : > { %v716_v63 = vmul.f32 %v1150_v62, %v714_v61  ;;  %vm722_vm9 = vweird.f32 %v1150_v62 }
 0x61c   : > { %vm723_vm11 = vmor %vm721_vm10, %vm722_vm9 }
 0x61d   : > { %v717_v0 = vmul.f32 %v1150_v62, %v716_v63 }
 0x61f   : > { %v718_v1 = vmul.f32 0.5, %v717_v0 }
 0x621   : > { %v719_v2 = vsub.f32 1.5, %v718_v1 }
 0x623   : > { %v720_v3 = vmul.f32 %v1150_v62, %v719_v2 }
 0x625   : > { %v724_v5 = vsel %vm723_vm11, %v1150_v62, %v720_v3 }
 0x626   : > { %v725_v6 = vmul.f32 %v724_v5, %v1573_v53 }
 0x628   : > { %v729_v7 = vmul.f32 %v1128_v4, %v725_v6 }
 0x62a   : > { %v730_v13 = vpack.c.bf16 %v729_v7, %v729_v7 }
 0x62c   : > { %1000 = vmatmul.msk.bf16.vlgmr.msrb.gmra.mxu1 %vm423_vm0, %v730_v13 }
 0x6a9   : > { %v759_v11 = vpop.f32.mrf.mxu1 }
 0x6aa   : > { %784 = vrot.lane.b32.xlu0 %v759_v11, %s1359_s29  ;;  %v1001_v14 = vmul.f32 -1.442695, %v759_v11  ;;  %s409_s29 = sand.u32 1, %s1341_s14  }
 0x6ab   : > { %s968_s30 = sshll.u32 %s409_s29, 3  ;;  %s841_s26 = scalar_lea.sflag [#allocation4], %s409_s29 }
 0x6ac   : > { %1151 = vpow2.f32 %v1001_v14  ;;  %s411_s11 = scalar_lea.vmem [#allocation10], %s968_s30 }
 0x6ad   : > { %s853_s12 = sshll.u32 %s411_s11, 4  ;;  %s854_s12 = int_to_ptr.vmem [resolvable:$true] %s853_s12 }
 0x6b1   : > { %v761_v12 = vpop.f32.mrf.mxu1 }
 0x6b2   : > { %v1152_v15 = vpop.eup %1151 }
 0x6b3   : > { %v766_v16 = vadd.f32 1.0, %v1152_v15 }
 0x6b5   : > { %1153 = vrcp.f32 %v766_v16  ;;  %v778_v23 = vand.u32 2147483648, %v766_v16  ;;  %vm772_vm13 = vweird.f32 %v766_v16  ;;  %v776_v24 = vand.u32 2147483647, %v766_v16 }
 0x6b7   : > { %v779_v26 = vor.u32 1.1754944e-38, %v778_v23  ;;  %vm777_vm15 = vcmp.eq.f32.partialorder %v776_v24, 8.507059e+37 }
 0x6bb   : > { %v1154_v18 = vpop.eup %1153 }
 0x6bc   : > { %v768_v19 = vmul.f32 %v1154_v18, %v766_v16  ;;  %vm773_vm12 = vweird.f32 %v1154_v18 }
 0x6bd   : > { %vm774_vm14 = vmor %vm772_vm13, %vm773_vm12 }
 0x6be   : > { %v769_v20 = vsub.f32 1.0, %v768_v19 }
 0x6c0   : > { %v770_v21 = vmul.f32 %v1154_v18, %v769_v20 }
 0x6c2   : > { %v771_v22 = vadd.f32 %v1154_v18, %v770_v21 }
 0x6c4   : > { %v775_v25 = vsel %vm774_vm14, %v1154_v18, %v771_v22 }
 0x6c5   : > { %v780_v27 = vsel %vm777_vm15, %v779_v26, %v775_v25 }
 0x6c6   : > { %v782_v28 = vmul.f32 %v780_v27, %v759_v11 }
 0x71c   : > { %v785_v29 = vpop.permute.xlu0 %784 }
 0x71d   : > { %v787_v30 = vmul.f32 %v785_v29, %v782_v28 }
 0x71f   : > { %v788_v31 = vpack.c.bf16 %v787_v30, %v787_v30 }
 0x721   : > { %1018 = vmatmul.msk.bf16.vlgmr.msrb.gmra.mxu3 %vm821_vm1, %v788_v31 }
 0x7a4   : > { %v834_v32 = vpop.f32.mrf.mxu3 }
 0x7a5   : > { %v838_v33 = vadd.f32 %v834_v32, %v1573_v53 }
 0x7a7   : > { %839 = vst.msk [vmem:[%s411_s11] sm:$0xff] %vm423_vm0, %v838_v33 }
 0x7a8   : > { %1302 = shalt.err (!%p1299_p8)
}
 0x7a9   : > { %1049 = dma.vmem_to_hbm [thread:$0]  (%p1462_p5), %s854_s12, 128, %s856_s21, %s841_s26  }
 0x7ac   : > { %v836_v34 = vpop.f32.mrf.mxu3 }
 0x7ad PF: > { %p1076_p9 = scmp.ge.s32.totalorder %s1349_s16, 2  ;;  %s867_s29 = sand.u32 1, %s1337_s13  }
 0x7ae   : > { %s868_s28 = scalar_lea.sflag [#allocation4], %s867_s29 }
 0x7af   : > { %p1065_p10 = pnand %p1076_p9, %p1466_p6 }
 0x7b1   : > { %p1066_p11 = pneg %p1065_p10 }
 0x7b3   : > { %1332 = dma.done.wait (%p1066_p11), %s868_s28, 128  }
 0x7b4   : > { %1334 = vsyncadd (%p1066_p11), %s868_s28, 4294967168  ;;  %s1655_s30 = sld [smem:[#allocation15_spill]]  ;;  %p23_p12 = scmp.ge.s32.totalorder %s1449_s19, 4  }
 0x7b5   : > { %s1656_s15 = sld [smem:[#allocation16_spill]]  ;;  %s1657_s13 = smov %s1341_s14 }
 0x7b6   : > { %s1659_s16 = smov %s1449_s19  ;;  %25 = sbr.rel (!%p23_p12) target bundleno = 10 (0xa), region = 112 }
 0x7ba   : > { %s1658_s14 = smov %s1655_s30 }
 0x7bb   :  { %874 = vsyncpa [#allocation3], 1 }
 0x7bc   :  { %876 = vsyncpa [#allocation3 + $0x1], 1 }
 0x7bd   :  { %877 = vsyncpa [#allocation6], 1 }
 0x7be   :  { %878 = vsyncpa [#allocation9], 1 }
 0x7bf   :  { %879 = vsyncpa [#allocation4], 1 }
 0x7c0   :  { %881 = vsyncpa [#allocation4 + $0x1], 1 }

</bundles_post_ra>
